<compile_context>
chip_gen: v6e
topology: v6e:2x2x1
jax: 0.10.0
libtpu: 0.0.40
codegen_flags: <defaults>
</compile_context>

<pallas_src>
import functools

import jax
import jax.numpy as jnp
from jax import lax
from jax.experimental import pallas as pl
from jax.experimental.pallas import tpu as pltpu


def _vmem_budgets():
    """(block_bytes per input block, vmem_limit_bytes), per TPU generation."""
    try:
        vmem_cap = pltpu.get_tpu_info().vmem_capacity_bytes
    except Exception:
        vmem_cap = 64 << 20                      # conservative (v7x-sized) default
    if vmem_cap >= (96 << 20):                   # v5e / v6e: 128 MiB physical VMEM
        return 6 << 20, 80 << 20
    return 4 << 20, 48 << 20                     # v7x-class: 64 MiB physical VMEM


def _grid_criterion_kernel(true_ref, pred_ref, hmask_ref, vmask_ref, out_ref,
                           acc_sq, acc_tv, *,
                           B, TB, H, W, L, bpc, smoothness_weight,
                           use_roll, needs_tail_mask):
    """Grid = (core_split, batch_blocks); inputs are lane-dense (TB, L=H*W) tiles.

    acc_sq / acc_tv : (1, 1) f32 VMEM accumulators (private per core)
    hmask / vmask   : (1, L) f32 loop-invariant TV masks (DMA'd once, multiplied in)
    """
    c = pl.program_id(0)
    i = pl.program_id(1)

    @pl.when(i == 0)
    def _init():
        acc_sq[...] = jnp.zeros_like(acc_sq)
        acc_tv[...] = jnp.zeros_like(acc_tv)

    t = true_ref[...].astype(jnp.float32)        # (TB, L), cast in-kernel
    p = pred_ref[...].astype(jnp.float32)
    hmask = hmask_ref[...]                       # (1, L)
    vmask = vmask_ref[...]

    def accumulate(t, p):
        d = t - p
        acc_sq[...] += jnp.sum(d * d, axis=(0, 1), keepdims=True)
        if use_roll:
            # Lane rolls (XLU slot): neighbor at +1 lane (horizontal) / +W lanes
            # (vertical).  Wrap-around lanes are exactly the masked ones, and rolls
            # never mix batch rows, so no cross-image special case is needed.
            tv = None
            if W > 1:
                h_nb = pltpu.roll(p, L - 1, axis=1)    # h_nb[., j] = p[., (j+1) % L]
                tv = jnp.abs(h_nb - p) * hmask
            if H > 1:
                v_nb = pltpu.roll(p, L - W, axis=1)    # v_nb[., j] = p[., (j+W) % L]
                vterm = jnp.abs(v_nb - p) * vmask
                tv = vterm if tv is None else tv + vterm
            if tv is not None:
                acc_tv[...] += jnp.sum(tv, axis=(0, 1), keepdims=True)
        else:
            # Slicing fallback for L % 128 != 0 (small / odd planes); full-value
            # sums, no partial-slice accumulator writes.
            if W > 1:
                hd = jnp.abs(p[:, 1:] - p[:, :L - 1]) * hmask[:, :L - 1]
                acc_tv[...] += jnp.sum(hd, axis=(0, 1), keepdims=True)
            if H > 1:
                vd = jnp.abs(p[:, W:] - p[:, :L - W])
                acc_tv[...] += jnp.sum(vd, axis=(0, 1), keepdims=True)

    if needs_tail_mask:
        g = c * bpc + i                          # global batch-block index (unclamped)
        partial = (g + 1) * TB > B               # block contains rows >= B

        @pl.when(partial)
        def _masked():
            row = lax.broadcasted_iota(jnp.int32, (TB, L), 0) + g * TB
            valid = row < B
            accumulate(jnp.where(valid, t, 0.0), jnp.where(valid, p, 0.0))

        @pl.when(jnp.logical_not(partial))
        def _full():
            accumulate(t, p)
    else:
        accumulate(t, p)

    @pl.when(i == bpc - 1)
    def _finalize():
        mse = acc_sq[...] / jnp.float32(B * L)   # mean over B*H*W pixels
        tvr = acc_tv[...] / jnp.float32(B)       # mean of per-image TV sums
        out_ref[...] = (mse + jnp.float32(smoothness_weight) * tvr).reshape(1, 1, 1)


def grid_criterion(true, predicted, smoothness_weight=0.001, *,
                   block_bytes=None, vmem_limit_bytes=None, max_core_splits=2):
    """Pallas implementation of GridCriterion.forward (inputs kept in native dtype)."""
    assert true.shape == predicted.shape and true.ndim == 3
    B, H, W = true.shape
    L = H * W

    default_bb, default_vl = _vmem_budgets()
    block_bytes = default_bb if block_bytes is None else block_bytes
    vmem_limit_bytes = default_vl if vmem_limit_bytes is None else vmem_limit_bytes

    # Padding-aware block sizing: a (TB, L) block really occupies
    # ceil(TB/8)*8 x ceil(L/128)*128 elements of VMEM (per pipeline buffer).
    itemsize = max(jnp.dtype(true.dtype).itemsize,
                   jnp.dtype(predicted.dtype).itemsize)
    l_pad = -(-L // 128) * 128
    bytes_per_8rows = 8 * l_pad * itemsize
    rows8 = max(1, block_bytes // bytes_per_8rows)
    TB = int(min(B, rows8 * 8))
    if TB < B:                                    # keep BlockSpec sublane-aligned
        TB = max(8, (TB // 8) * 8)

    n_blocks = -(-B // TB)
    num_splits = min(max_core_splits, n_blocks)   # leading 'parallel' axis (v7x 2 TCs)
    bpc = -(-n_blocks // num_splits)              # batch blocks per core
    needs_tail_mask = (B % TB != 0) or (num_splits * bpc != n_blocks)
    use_roll = (L % 128 == 0) and L > 1

    # Lane-dense layout: contiguous collapse, no data movement.
    true2 = jnp.reshape(true, (B, L))
    pred2 = jnp.reshape(predicted, (B, L))

    # Loop-invariant TV masks, DMA'd into VMEM once (constant index_map below).
    idx = jnp.arange(L, dtype=jnp.int32)
    hmask = ((idx % W) != (W - 1)).astype(jnp.float32).reshape(1, L)
    vmask = (idx < (L - W)).astype(jnp.float32).reshape(1, L)

    kernel = functools.partial(
        _grid_criterion_kernel,
        B=B, TB=TB, H=H, W=W, L=L, bpc=bpc,
        smoothness_weight=float(smoothness_weight),
        use_roll=use_roll, needs_tail_mask=needs_tail_mask)

    def batch_block(c, i):
        # Clamp so an overflowing per-core block still DMAs valid memory; its
        # contribution is zeroed in-kernel via the tail mask.
        return (jnp.minimum(c * bpc + i, n_blocks - 1), 0)

    out = pl.pallas_call(
        kernel,
        out_shape=jax.ShapeDtypeStruct((num_splits, 1, 1), jnp.float32),
        grid_spec=pltpu.PrefetchScalarGridSpec(
            num_scalar_prefetch=0,
            grid=(num_splits, bpc),
            in_specs=[
                pl.BlockSpec((TB, L), batch_block),
                pl.BlockSpec((TB, L), batch_block),
                pl.BlockSpec((1, L), lambda c, i: (0, 0)),   # hmask (resident)
                pl.BlockSpec((1, L), lambda c, i: (0, 0)),   # vmask (resident)
            ],
            out_specs=pl.BlockSpec((1, 1, 1), lambda c, i: (c, 0, 0)),
            scratch_shapes=[
                pltpu.VMEM((1, 1), jnp.float32),   # running sum of squared errors
                pltpu.VMEM((1, 1), jnp.float32),   # running sum of total variation
            ],
        ),
        compiler_params=pltpu.CompilerParams(
            dimension_semantics=("parallel", "arbitrary"),
            vmem_limit_bytes=int(vmem_limit_bytes),
        ),
    )(true2, pred2, hmask, vmask)

    return jnp.sum(out)               # combine per-core partial losses


def _reference(true, predicted, smoothness_weight=0.001):
    """Pure-JAX reference matching the torch module exactly."""
    mse = jnp.mean(jnp.abs(true - predicted) ** 2)
    hdiff = jnp.abs(jnp.diff(predicted, axis=2))
    vdiff = jnp.abs(jnp.diff(predicted, axis=1))
    tv = jnp.sum(hdiff, axis=(1, 2)) + jnp.sum(vdiff, axis=(1, 2))
    return mse + smoothness_weight * jnp.mean(tv)


if __name__ == "__main__":
    key = jax.random.PRNGKey(0)
    k1, k2, k3, k4, k5, k6 = jax.random.split(key, 6)

    # 1) Module-sized input: roll TV path, single block, single core split.
    t1 = jax.random.normal(k1, (2, 16, 16), dtype=jnp.float32)
    p1 = jax.random.normal(k2, (2, 16, 16), dtype=jnp.float32)
    out1 = jax.block_until_ready(grid_criterion(t1, p1))
    ref1 = _reference(t1, p1)
    assert jnp.abs(out1 - ref1) < 1e-4, (out1, ref1)

    # 2) Multi-block: exercises batch tail masking, the 2-way core split, and the
    #    clamped overflow block (3 batch blocks over 2 splits).
    t2 = jax.random.normal(k3, (20, 16, 16), dtype=jnp.float32)
    p2 = jax.random.normal(k4, (20, 16, 16), dtype=jnp.float32)
    out2 = jax.block_until_ready(
        grid_criterion(t2, p2, block_bytes=8192, vmem_limit_bytes=32 << 20))
    ref2 = _reference(t2, p2)
    assert jnp.abs(out2 - ref2) < 1e-4, (out2, ref2)

    # 3) Non-128-multiple plane: exercises the slicing-fallback TV path.
    t3 = jax.random.normal(k5, (3, 10, 12), dtype=jnp.float32)
    p3 = jax.random.normal(k6, (3, 10, 12), dtype=jnp.float32)
    out3 = jax.block_until_ready(grid_criterion(t3, p3))
    ref3 = _reference(t3, p3)
    assert jnp.abs(out3 - ref3) < 1e-4, (out3, ref3)

    print("KERNEL_OK")
</pallas_src>

<mosaic_0001>
module attributes {stable_mosaic.version = 11 : i64} {
  func.func @_grid_criterion_kernel(%arg0: i32, %arg1: i32, %arg2: memref<2x256xf32, #tpu.memory_space<vmem>>, %arg3: memref<2x256xf32, #tpu.memory_space<vmem>>, %arg4: memref<1x256xf32, #tpu.memory_space<vmem>>, %arg5: memref<1x256xf32, #tpu.memory_space<vmem>>, %arg6: memref<1x1x1xf32, #tpu.memory_space<vmem>>, %arg7: memref<1x1xf32, #tpu.memory_space<vmem>>, %arg8: memref<1x1xf32, #tpu.memory_space<vmem>>) attributes {dimension_semantics = [#tpu.dimension_semantics<parallel>, #tpu.dimension_semantics<arbitrary>], iteration_bounds = array<i64: 1, 1>, scalar_prefetch = 0 : i64, scratch_operands = 2 : i64, tpu.core_type = #tpu.core_type<tc>, window_params = [{transform_indices = @transform_0, window_bounds = array<i64: 2, 256>}, {transform_indices = @transform_1, window_bounds = array<i64: 2, 256>}, {pipeline_mode = #tpu.pipeline_mode<synchronous>, transform_indices = @transform_2, window_bounds = array<i64: 1, 256>}, {pipeline_mode = #tpu.pipeline_mode<synchronous>, transform_indices = @transform_3, window_bounds = array<i64: 1, 256>}, {transform_indices = @transform_4, window_bounds = array<i64: 1, 1, 1>}]} {
    %c0_i32 = arith.constant 0 : i32
    %0 = arith.cmpi eq, %arg1, %c0_i32 : i32
    %1 = arith.extui %0 : i1 to i32
    %c0_i32_0 = arith.constant 0 : i32
    %2 = arith.cmpi ne, %1, %c0_i32_0 : i32
    scf.if %2 {
      %cst_19 = arith.constant 0.000000e+00 : f32
      %39 = vector.broadcast %cst_19 : f32 to vector<1x1xf32>
      %c0_20 = arith.constant 0 : index
      %c0_21 = arith.constant 0 : index
      %40 = vector.load %arg7[%c0_20, %c0_21] : memref<1x1xf32, #tpu.memory_space<vmem>>, vector<1x1xf32>
      tpu.vector_store %arg7[%c0_20, %c0_21], %39 {strides = array<i32>} : memref<1x1xf32, #tpu.memory_space<vmem>>, vector<1x1xf32>,
      %cst_22 = arith.constant 0.000000e+00 : f32
      %41 = vector.broadcast %cst_22 : f32 to vector<1x1xf32>
      %c0_23 = arith.constant 0 : index
      %c0_24 = arith.constant 0 : index
      %42 = vector.load %arg8[%c0_23, %c0_24] : memref<1x1xf32, #tpu.memory_space<vmem>>, vector<1x1xf32>
      tpu.vector_store %arg8[%c0_23, %c0_24], %41 {strides = array<i32>} : memref<1x1xf32, #tpu.memory_space<vmem>>, vector<1x1xf32>,
    } else {
    }
    %c0 = arith.constant 0 : index
    %c0_1 = arith.constant 0 : index
    %3 = vector.load %arg2[%c0, %c0_1] : memref<2x256xf32, #tpu.memory_space<vmem>>, vector<2x256xf32>
    %c0_2 = arith.constant 0 : index
    %c0_3 = arith.constant 0 : index
    %4 = vector.load %arg3[%c0_2, %c0_3] : memref<2x256xf32, #tpu.memory_space<vmem>>, vector<2x256xf32>
    %c0_4 = arith.constant 0 : index
    %c0_5 = arith.constant 0 : index
    %5 = vector.load %arg4[%c0_4, %c0_5] : memref<1x256xf32, #tpu.memory_space<vmem>>, vector<1x256xf32>
    %c0_6 = arith.constant 0 : index
    %c0_7 = arith.constant 0 : index
    %6 = vector.load %arg5[%c0_6, %c0_7] : memref<1x256xf32, #tpu.memory_space<vmem>>, vector<1x256xf32>
    %7 = arith.subf %3, %4 : vector<2x256xf32>
    %c0_8 = arith.constant 0 : index
    %c0_9 = arith.constant 0 : index
    %8 = vector.load %arg7[%c0_8, %c0_9] : memref<1x1xf32, #tpu.memory_space<vmem>>, vector<1x1xf32>
    %9 = arith.mulf %7, %7 : vector<2x256xf32>
    %10 = vector.shape_cast %9 : vector<2x256xf32> to vector<1x2x256xf32>
    %cst = arith.constant dense<0.000000e+00> : vector<1xf32>
    %11 = vector.multi_reduction <add>, %10, %cst [1, 2] : vector<1x2x256xf32> to vector<1xf32>
    %12 = vector.shape_cast %11 : vector<1xf32> to vector<1x1x1xf32>
    %13 = vector.extract %12[0, 0, 0] : f32 from vector<1x1x1xf32>
    %14 = vector.broadcast %13 : f32 to vector<1x1xf32>
    %15 = arith.addf %8, %14 : vector<1x1xf32>
    %c0_10 = arith.constant 0 : index
    %c0_11 = arith.constant 0 : index
    %16 = vector.load %arg7[%c0_10, %c0_11] : memref<1x1xf32, #tpu.memory_space<vmem>>, vector<1x1xf32>
    tpu.vector_store %arg7[%c0_10, %c0_11], %15 {strides = array<i32>} : memref<1x1xf32, #tpu.memory_space<vmem>>, vector<1x1xf32>,
    %c255_i32 = arith.constant 255 : i32
    %17 = tpu.dynamic_rotate %4 by %c255_i32 dim 1 : vector<2x256xf32>, i32 -> vector<2x256xf32>
    %18 = arith.subf %17, %4 : vector<2x256xf32>
    %19 = math.absf %18 : vector<2x256xf32>
    %20 = vector.broadcast %5 : vector<1x256xf32> to vector<2x256xf32>
    %21 = arith.mulf %19, %20 : vector<2x256xf32>
    %c240_i32 = arith.constant 240 : i32
    %22 = tpu.dynamic_rotate %4 by %c240_i32 dim 1 : vector<2x256xf32>, i32 -> vector<2x256xf32>
    %23 = arith.subf %22, %4 : vector<2x256xf32>
    %24 = math.absf %23 : vector<2x256xf32>
    %25 = vector.broadcast %6 : vector<1x256xf32> to vector<2x256xf32>
    %26 = arith.mulf %24, %25 : vector<2x256xf32>
    %27 = arith.addf %21, %26 : vector<2x256xf32>
    %c0_12 = arith.constant 0 : index
    %c0_13 = arith.constant 0 : index
    %28 = vector.load %arg8[%c0_12, %c0_13] : memref<1x1xf32, #tpu.memory_space<vmem>>, vector<1x1xf32>
    %29 = vector.shape_cast %27 : vector<2x256xf32> to vector<1x2x256xf32>
    %cst_14 = arith.constant dense<0.000000e+00> : vector<1xf32>
    %30 = vector.multi_reduction <add>, %29, %cst_14 [1, 2] : vector<1x2x256xf32> to vector<1xf32>
    %31 = vector.shape_cast %30 : vector<1xf32> to vector<1x1x1xf32>
    %32 = vector.extract %31[0, 0, 0] : f32 from vector<1x1x1xf32>
    %33 = vector.broadcast %32 : f32 to vector<1x1xf32>
    %34 = arith.addf %28, %33 : vector<1x1xf32>
    %c0_15 = arith.constant 0 : index
    %c0_16 = arith.constant 0 : index
    %35 = vector.load %arg8[%c0_15, %c0_16] : memref<1x1xf32, #tpu.memory_space<vmem>>, vector<1x1xf32>
    tpu.vector_store %arg8[%c0_15, %c0_16], %34 {strides = array<i32>} : memref<1x1xf32, #tpu.memory_space<vmem>>, vector<1x1xf32>,
    %c0_i32_17 = arith.constant 0 : i32
    %36 = arith.cmpi eq, %arg1, %c0_i32_17 : i32
    %37 = arith.extui %36 : i1 to i32
    %c0_i32_18 = arith.constant 0 : i32
    %38 = arith.cmpi ne, %37, %c0_i32_18 : i32
    scf.if %38 {
      %c0_19 = arith.constant 0 : index
      %c0_20 = arith.constant 0 : index
      %39 = vector.load %arg7[%c0_19, %c0_20] : memref<1x1xf32, #tpu.memory_space<vmem>>, vector<1x1xf32>
      %cst_21 = arith.constant 5.120000e+02 : f32
      %40 = vector.broadcast %cst_21 : f32 to vector<1x1xf32>
      %41 = arith.divf %39, %40 : vector<1x1xf32>
      %c0_22 = arith.constant 0 : index
      %c0_23 = arith.constant 0 : index
      %42 = vector.load %arg8[%c0_22, %c0_23] : memref<1x1xf32, #tpu.memory_space<vmem>>, vector<1x1xf32>
      %cst_24 = arith.constant 2.000000e+00 : f32
      %43 = vector.broadcast %cst_24 : f32 to vector<1x1xf32>
      %44 = arith.divf %42, %43 : vector<1x1xf32>
      %cst_25 = arith.constant 1.000000e-03 : f32
      %45 = vector.broadcast %cst_25 : f32 to vector<1x1xf32>
      %46 = arith.mulf %45, %44 : vector<1x1xf32>
      %47 = arith.addf %41, %46 : vector<1x1xf32>
      %48 = vector.shape_cast %47 : vector<1x1xf32> to vector<1x1x1xf32>
      %c0_26 = arith.constant 0 : index
      %c0_27 = arith.constant 0 : index
      %c0_28 = arith.constant 0 : index
      %49 = vector.load %arg6[%c0_26, %c0_27, %c0_28] : memref<1x1x1xf32, #tpu.memory_space<vmem>>, vector<1x1x1xf32>
      tpu.vector_store %arg6[%c0_26, %c0_27, %c0_28], %48 {strides = array<i32>} : memref<1x1x1xf32, #tpu.memory_space<vmem>>, vector<1x1x1xf32>,
    } else {
    }
    return
  }
  func.func @transform_0(%arg0: i32, %arg1: i32) -> (i32, i32) {
    %c1_i32 = arith.constant 1 : i32
    %0 = arith.muli %arg0, %c1_i32 : i32
    %1 = arith.addi %0, %arg1 : i32
    %c0_i32 = arith.constant 0 : i32
    %2 = arith.minsi %1, %c0_i32 : i32
    %c0_i32_0 = arith.constant 0 : i32
    %c0_i32_1 = arith.constant 0 : i32
    return %2, %c0_i32_0 : i32, i32
  }
  func.func @transform_1(%arg0: i32, %arg1: i32) -> (i32, i32) {
    %c1_i32 = arith.constant 1 : i32
    %0 = arith.muli %arg0, %c1_i32 : i32
    %1 = arith.addi %0, %arg1 : i32
    %c0_i32 = arith.constant 0 : i32
    %2 = arith.minsi %1, %c0_i32 : i32
    %c0_i32_0 = arith.constant 0 : i32
    %c0_i32_1 = arith.constant 0 : i32
    return %2, %c0_i32_0 : i32, i32
  }
  func.func @transform_2(%arg0: i32, %arg1: i32) -> (i32, i32) {
    %c0_i32 = arith.constant 0 : i32
    %c0_i32_0 = arith.constant 0 : i32
    %c0_i32_1 = arith.constant 0 : i32
    return %c0_i32, %c0_i32_0 : i32, i32
  }
  func.func @transform_3(%arg0: i32, %arg1: i32) -> (i32, i32) {
    %c0_i32 = arith.constant 0 : i32
    %c0_i32_0 = arith.constant 0 : i32
    %c0_i32_1 = arith.constant 0 : i32
    return %c0_i32, %c0_i32_0 : i32, i32
  }
  func.func @transform_4(%arg0: i32, %arg1: i32) -> (i32, i32, i32) {
    %c0_i32 = arith.constant 0 : i32
    %c0_i32_0 = arith.constant 0 : i32
    %c0_i32_1 = arith.constant 0 : i32
    return %arg0, %c0_i32, %c0_i32_0 : i32, i32, i32
  }
}

</mosaic_0001>

<bundles_post_ra>
// kernel: tpu_custom_call.1
= control target key start
LH: loop header
LB: loop body
LE: loop exit
PB: predicated region body
PF: predicated region fallthrough
CT: control target
= control target key end

     0   :  { %9 = vsyncpa [#allocation5], 0  ;;  %s346_s0 = inlined_call_operand.hbm [shape: f32[2,256], index: 0, kind: input, shape index: {}]   ;;  %s347_s1 = inlined_call_operand.hbm [shape: f32[2,256], index: 1, kind: input, shape index: {}]   ;;  %s348_s2 = inlined_call_operand.vmem [shape: f32[1,256], index: 2, kind: input, shape index: {}]   ;;  %s349_s3 = inlined_call_operand.vmem [shape: f32[1,256], index: 3, kind: input, shape index: {}]   ;;  %s350_s4 = inlined_call_operand.hbm [shape: f32[1,1,1], index: 4, kind: output, shape index: {}]  }
   0x1   :  { %10 = vsyncpa [#allocation8], 0 }
   0x2   :  { %11 = vsyncpa [#allocation6], 0  ;;  %s290_s15 = smov [#allocation4]   ;;  %s291_s17 = smov [#allocation7]  }
   0x3   :  { %s24_s16 = sshll.u32 %s290_s15, 4  ;;  %s40_s18 = sshll.u32 %s291_s17, 4  ;;  %s25_s16 = int_to_ptr.vmem [resolvable:$true] %s24_s16  ;;  %s41_s18 = int_to_ptr.vmem [resolvable:$true] %s40_s18 }
   0x4   :  { %s232_s19 = scalar_lea.vmem %s25_s16, 64  ;;  %p237_p1 = scmp.lt.s32.totalorder %s25_s16, %s25_s16 }
   0x5   :  { %p233_p0 = scmp.ne.s32.totalorder %s25_s16, %s232_s19  ;;  %p238_p2 = scmp.lt.s32.totalorder %s232_s19, %s232_s19 }
   0x7   :  { %p239_p3 = por %p238_p2, %p237_p1 }
   0x9   :  { %p240_p4 = pnand %p239_p3, %p233_p0 }
   0xb   :  { %243 = shalt.err (!%p240_p4)
}
   0xc   :  { %27 = dma.hbm_to_vmem [thread:$0]  %s346_s0, 64, %s25_s16, [#allocation5]  }
   0xd   :  { %s252_s22 = scalar_lea.vmem %s41_s18, 64  ;;  %p257_p6 = scmp.lt.s32.totalorder %s41_s18, %s41_s18 }
   0xe   :  { %p253_p5 = scmp.ne.s32.totalorder %s41_s18, %s252_s22  ;;  %p258_p7 = scmp.lt.s32.totalorder %s252_s22, %s252_s22 }
  0x10   :  { %p259_p8 = por %p258_p7, %p257_p6 }
  0x12   :  { %p260_p9 = pnand %p259_p8, %p253_p5 }
  0x14   :  { %263 = shalt.err (!%p260_p9)
}
  0x15   :  { %43 = dma.hbm_to_vmem [thread:$0]  %s347_s1, 64, %s41_s18, [#allocation8]  }
  0x16   :  { %284 = dma.done.wait [#allocation5], 64  }
  0x17   :  { %285 = vsyncadd [#allocation5], 4294967232 }
  0x18   :  { %286 = dma.done.wait [#allocation8], 64  }
  0x19   :  { %287 = vsyncadd [#allocation8], 4294967232  ;;  %v78_v0 = vlaneseq  ;;  %v292_v1 = vmov 1983009808   ;;  %v68_v6 = vld [vmem:[#allocation7] sm:$0xf] }
  0x1a   :  { %v76_v2 = vunpack.c.l.s4 %v292_v1  ;;  %s293_s0 = smov 112   ;;  %s294_s25 = smov 127   ;;  %v67_v9 = vld [vmem:[#allocation4] sm:$0xf]  ;;  %vm85_vm0 = vcmask 1041408   ;;  %vm64_vm3 = vcmask 0  }
  0x1b   :  { %v79_v3 = vshrl.u32 %v78_v0, 7  ;;  %v71_v10 = vsub.f32 %v67_v9, %v68_v6  ;;  %v118_v17 = vand.u32 127, %v78_v0  ;;  %v70_v22 = vld [vmem:[%s349_s3] sm:$0x3]  ;;  %v295_v51 = vmov 0.0   ;;  %s296_s29 = smov [#allocation9]  }
  0x1c   :  { %v77_v4 = vunpack.c.0.s8 %v76_v2  ;;  %v69_v23 = vld [vmem:[%s348_s2] sm:$0x3]  ;;  %65 = vst.msk [vmem:[#allocation2] sm:$0x1] %vm64_vm3, %v295_v51  ;;  %66 = vst.msk [vmem:[#allocation3] sm:$0x1] %vm64_vm3, %v295_v51 }
  0x1d   :  { %v73_v11 = vmul.f32 %v71_v10, %v71_v10  ;;  %v129_v20 = vsub.s32 0, %v79_v3  ;;  %v133_v21 = vsub.s32 1, %v79_v3  ;;  %vm143_vm1 = vcmp.lt.s32.totalorder %v118_v17, 112  ;;  %s199_s30 = sshll.u32 %s296_s29, 4  ;;  %s200_s30 = int_to_ptr.vmem [resolvable:$true] %s199_s30 }
  0x1e   :  { %v80_v5 = vsub.s32 %v77_v4, %v79_v3  ;;  %vm119_vm2 = vcmp.lt.s32.totalorder %v118_v17, 127  ;;  %s264_s5 = scalar_lea.vmem %s200_s30, 16  ;;  %s268_s6 = scalar_lea.vmem %s200_s30, 32 }
  0x1f   :  { %v154_v24 = vrot.slane %v70_v22, %v129_v20  ;;  %v158_v25 = vrot.slane %v70_v22, %v133_v21  ;;  %v130_v27 = vrot.slane %v69_v23, %v129_v20  ;;  %v134_v37 = vrot.slane %v69_v23, %v133_v21  ;;  %p265_p10 = scmp.ne.s32.totalorder %s200_s30, %s264_s5  ;;  %p269_p11 = scmp.lt.s32.totalorder %s200_s30, %s200_s30 }
  0x20   :  { %v109_v7 = vrot.slane %v68_v6, %v80_v5  ;;  %v81_v12 = vrot.slane %v73_v11, %v80_v5  ;;  %p270_p12 = scmp.lt.s32.totalorder %s268_s6, %s264_s5 }
  0x22   :  { %139 = vrot.lane.b32.xlu1 %v109_v7, %s293_s0  ;;  %113 = vrot.lane.b32.xlu0 %v109_v7, %s294_s25  ;;  %v110_v8 = vcombine.high %v109_v7, %v109_v7  ;;  %v82_v13 = vcombine.high %v81_v12, %v81_v12  ;;  %v86_v14 = vsel %vm85_vm0, %v81_v12, 0.0  ;;  %p271_p13 = por %p270_p12, %p269_p11 }
  0x23   :  { %v72_v59 = vld [vmem:[#allocation2] sm:$0x1]  ;;  %v165_v5 = vld [vmem:[#allocation3] sm:$0x1] }
  0x24   :  { %v87_v15 = vsel %vm85_vm0, %v82_v13, 0.0  ;;  %p272_p0 = pnand %p271_p13, %p265_p10 }
  0x25   :  { %v88_v16 = vadd.f32 %v87_v15, %v86_v14 }
  0x26   :  { %141 = vrot.lane.b32.xlu1 %v110_v8, %s293_s0  ;;  %115 = vrot.lane.b32.xlu0 %v110_v8, %s294_s25 }
  0x45   :  { %89 = vadd.xlane.f32.xlu0 %v88_v16 }
  0x94   :  { %v140_v18 = vpop.permute.xlu1 %139  ;;  %v114_v19 = vpop.permute.xlu0 %113 }
  0x98   :  { %v142_v26 = vpop.permute.xlu1 %141  ;;  %v116_v28 = vpop.permute.xlu0 %115 }
  0x99   :  { %v144_v29 = vsel %vm143_vm1, %v140_v18, %v142_v26  ;;  %v145_v30 = vsel %vm143_vm1, %v142_v26, %v140_v18  ;;  %v120_v31 = vsel %vm119_vm2, %v114_v19, %v116_v28  ;;  %v121_v32 = vsel %vm119_vm2, %v116_v28, %v114_v19 }
  0x9a   :  { %v146_v33 = vsub.f32 %v144_v29, %v109_v7  ;;  %v147_v34 = vsub.f32 %v145_v30, %v110_v8  ;;  %v122_v35 = vsub.f32 %v120_v31, %v109_v7  ;;  %v123_v36 = vsub.f32 %v121_v32, %v110_v8 }
  0x9c   :  { %v148_v38 = vand.u32 2147483647, %v146_v33  ;;  %v149_v39 = vand.u32 2147483647, %v147_v34  ;;  %v124_v40 = vand.u32 2147483647, %v122_v35 }
  0x9d   :  { %v125_v41 = vand.u32 2147483647, %v123_v36 }
  0x9e   :  { %v161_v42 = vmul.f32 %v154_v24, %v148_v38  ;;  %v162_v43 = vmul.f32 %v158_v25, %v149_v39  ;;  %v137_v44 = vmul.f32 %v130_v27, %v124_v40 }
  0x9f   :  { %v138_v45 = vmul.f32 %v134_v37, %v125_v41 }
  0xa0   :  { %v163_v46 = vadd.f32 %v161_v42, %v137_v44 }
  0xa1   :  { %v164_v47 = vadd.f32 %v162_v43, %v138_v45 }
  0xa2   :  { %v166_v48 = vsel %vm85_vm0, %v163_v46, 0.0 }
  0xa3   :  { %v167_v49 = vsel %vm85_vm0, %v164_v47, 0.0 }
  0xa4   :  { %v168_v50 = vadd.f32 %v167_v49, %v166_v48 }
  0xa6   :  { %169 = vadd.xlane.f32.xlu1 %v168_v50 }
  0xce   :  { %v90_v52 = vpop.xlane.xlu0 %89 }
  0xcf   :  { %v91_v53 = vrot.slane %v90_v52, 4 }
  0xd1   :  { %v92_v54 = vadd.f32 %v91_v53, %v90_v52 }
  0xd3   :  { %v93_v55 = vrot.slane %v92_v54, 2 }
  0xd5   :  { %v94_v56 = vadd.f32 %v93_v55, %v92_v54 }
  0xd7   :  { %v95_v57 = vrot.slane %v94_v56, 1 }
  0xd9   :  { %v96_v58 = vadd.f32 %v95_v57, %v94_v56 }
  0xdb   :  { %213 = vpush %v96_v58 }
 0x10c   :  { %s214_s2 = spop %213 }
 0x10d   :  { %v98_v60 = vstv %s214_s2 }
 0x10e   :  { %v99_v61 = vadd.f32 %v98_v60, %v72_v59 }
 0x110   :  { %101 = vst.msk [vmem:[#allocation2] sm:$0x1] %vm64_vm3, %v99_v61 }
 0x117   :  { %v184_v8 = vld [vmem:[#allocation2] sm:$0x1] }
 0x118   :  { %v186_v11 = vmul.f32 0.001953125, %v184_v8 }
 0x12f   :  { %v170_v62 = vpop.xlane.xlu1 %169 }
 0x130   :  { %v171_v63 = vrot.slane %v170_v62, 4 }
 0x132   :  { %v172_v0 = vadd.f32 %v171_v63, %v170_v62 }
 0x134   :  { %v173_v1 = vrot.slane %v172_v0, 2 }
 0x136   :  { %v174_v2 = vadd.f32 %v173_v1, %v172_v0 }
 0x138   :  { %v175_v3 = vrot.slane %v174_v2, 1 }
 0x13a   :  { %v176_v4 = vadd.f32 %v175_v3, %v174_v2 }
 0x13c   :  { %215 = vpush %v176_v4 }
 0x16d   :  { %s216_s3 = spop %215 }
 0x16e   :  { %v178_v6 = vstv %s216_s3 }
 0x16f   :  { %v179_v7 = vadd.f32 %v178_v6, %v165_v5 }
 0x171   :  { %180 = vst.msk [vmem:[#allocation3] sm:$0x1] %vm64_vm3, %v179_v7 }
 0x178   :  { %v187_v9 = vld [vmem:[#allocation3] sm:$0x1] }
 0x179   :  { %v189_v10 = vmul.f32 0.5, %v187_v9 }
 0x17b   :  { %v190_v12 = vmul.f32 0.001, %v189_v10 }
 0x17d   :  { %v191_v13 = vadd.f32 %v190_v12, %v186_v11 }
 0x17f   :  { %192 = vst.msk [vmem:[#allocation9] sm:$0x1] %vm64_vm3, %v191_v13 }
 0x180   :  { %275 = shalt.err (!%p272_p0)
}
 0x181   :  { %202 = dma.vmem_to_hbm [thread:$0]  %s200_s30, 16, %s350_s4, [#allocation6]  }
 0x182   :  { %288 = dma.done.wait [#allocation6], 16  }
 0x183   :  { %289 = vsyncadd [#allocation6], 4294967280 }
 0x184   :  { %206 = vsyncpa [#allocation5], 1 }
 0x185   :  { %207 = vsyncpa [#allocation8], 1 }
 0x186   :  { %208 = vsyncpa [#allocation6], 1 }

</bundles_post_ra>
